<compile_context>
chip_gen: v6e
topology: v6e:2x2x1
jax: 0.10.0
libtpu: 0.0.40
codegen_flags: <defaults>
</compile_context>

<pallas_src>
import jax
import jax.numpy as jnp
from jax.experimental import pallas as pl
from jax.experimental.pallas import tpu as pltpu


def _make_kernel(k):
    def kernel(x_ref, w1_ref, s1_ref, sh1_ref, w2_ref, b2_ref, out_ref):
        x = x_ref[...]                                    # (c_in_p, W) bf16

        # ---- conv1: all K taps fused into one MXU contraction -------------------
        # Tap kk needs column j+kk; a cyclic lane shift by -kk supplies it.  The
        # wrapped / cross-sample columns only land in per-sample tail padding,
        # which never feeds a valid output and is cropped in the wrapper.
        taps = [x] + [jnp.roll(x, -kk, axis=1) for kk in range(1, k)]
        rhs = jnp.concatenate(taps, axis=0)               # (K*c_in_p, W) bf16
        acc1 = jnp.dot(w1_ref[...], rhs,
                       preferred_element_type=jnp.float32)  # (hidden, W) f32

        # conv1-bias + BatchNorm (inference) folded affine + ReLU (single affine,
        # no per-sample broadcast).  Dropout(0.1) is identity in eval mode and
        # leaky_relu(relu(x)) == relu(x).
        h = jnp.maximum(acc1 * s1_ref[...] + sh1_ref[...], 0.0).astype(jnp.bfloat16)

        # ---- conv2 re-associated ------------------------------------------------
        # Project onto the K tap rows first (M=K matmul), then combine the taps with
        # K cheap single-row lane shifts instead of K full-height copies of h.
        p = jnp.dot(w2_ref[...], h,
                    preferred_element_type=jnp.float32)   # (K, W) f32
        y = p[0:1, :]
        for kk in range(1, k):
            y = y + jnp.roll(p[kk:kk + 1, :], -kk, axis=1)
        y = y + b2_ref[0, 0]
        out_ref[...] = jnp.where(y >= 0.0, y, 0.01 * y)   # leaky_relu

    return kernel


def discriminator_forward(x, w1, b1, gamma, beta, run_mean, run_var, w2, b2,
                          *, eps=1e-5, b_tile=8):
    """x: (N, C_in, L) f32.  Returns (N, 1, L - 2*(K-1)) f32."""
    n, c_in, l_in = x.shape
    hidden, _, k = w1.shape
    l1 = l_in - k + 1
    l2 = l1 - k + 1

    # Per-sample lane segment: 128-aligned so every block / store is lane-dense.
    seg = ((l_in + 127) // 128) * 128
    # Keep >=2 grid steps when possible so v7x can shard the batch axis over 2 TCs.
    b_tile = max(1, min(b_tile, (n + 1) // 2))
    n_p = ((n + b_tile - 1) // b_tile) * b_tile
    w_lanes = b_tile * seg
    # Channel padding to a sublane multiple keeps the in-kernel im2col concat dense.
    c_in_p = ((c_in + 7) // 8) * 8

    # x -> (c_in_p, N*seg): batch concatenated along lanes, bf16 for the MXU.
    x_p = jnp.pad(x, ((0, n_p - n), (0, c_in_p - c_in), (0, seg - l_in)))
    x_flat = jnp.transpose(x_p, (1, 0, 2)).reshape(c_in_p, n_p * seg)
    x_flat = x_flat.astype(jnp.bfloat16)

    # conv1 weights flattened tap-major to match the in-kernel im2col stacking:
    # column index = kk*c_in_p + c.
    w1_p = jnp.pad(w1, ((0, 0), (0, c_in_p - c_in), (0, 0)))
    w1_flat = jnp.transpose(w1_p, (0, 2, 1)).reshape(hidden, k * c_in_p)
    w1_flat = w1_flat.astype(jnp.bfloat16)

    # Fold conv1 bias + BatchNorm (inference) into per-channel scale/shift (f32).
    scale = gamma / jnp.sqrt(run_var + eps)
    shift = scale * (b1 - run_mean) + beta
    s1 = scale.reshape(hidden, 1).astype(jnp.float32)
    sh1 = shift.reshape(hidden, 1).astype(jnp.float32)

    # conv2 weights as tap rows: (K, hidden), w2_t[kk, h] = w2[0, h, kk].
    w2_t = jnp.transpose(w2[0], (1, 0)).astype(jnp.bfloat16)
    b2v = b2.reshape(1, 1).astype(jnp.float32)

    kernel = _make_kernel(k)

    out_flat = pl.pallas_call(
        kernel,
        out_shape=jax.ShapeDtypeStruct((1, n_p * seg), jnp.float32),
        grid_spec=pltpu.PrefetchScalarGridSpec(
            num_scalar_prefetch=0,
            grid=(n_p // b_tile,),
            in_specs=[
                pl.BlockSpec((c_in_p, w_lanes), lambda i: (0, i)),          # x (batch-on-lanes)
                pl.BlockSpec((hidden, k * c_in_p), lambda i: (0, 0)),       # w1 (tap-major, flat)
                pl.BlockSpec((hidden, 1), lambda i: (0, 0)),                # fused BN scale
                pl.BlockSpec((hidden, 1), lambda i: (0, 0)),                # fused BN shift
                pl.BlockSpec((k, hidden), lambda i: (0, 0)),                # w2 tap rows
                pl.BlockSpec(memory_space=pltpu.MemorySpace.SMEM),          # b2 scalar
            ],
            out_specs=pl.BlockSpec((1, w_lanes), lambda i: (0, i)),         # lane-dense slab
        ),
        compiler_params=pltpu.CompilerParams(
            dimension_semantics=("parallel",),     # batch tiles shard across TCs
            vmem_limit_bytes=48 * 1024 * 1024),    # < v7x physical, > default scoped
    )(x_flat, w1_flat, s1, sh1, w2_t, b2v)

    # Crop padding and restore PyTorch's (N, 1, L_out) layout (free layout plumbing).
    out = out_flat.reshape(n_p, seg)[:n, :l2]
    return out[:, None, :]


# ---------------- pure-JAX reference (for correctness check) ----------------
def _reference(x, w1, b1, gamma, beta, run_mean, run_var, w2, b2, eps=1e-5):
    def conv1d_valid(x, w, b):          # x (N,Ci,L), w (Co,Ci,K), b (Co,)
        n, ci, l = x.shape
        co, _, k = w.shape
        lo = l - k + 1
        acc = jnp.zeros((n, co, lo), jnp.float32)
        for kk in range(k):
            acc += jnp.einsum('oc,ncl->nol', w[:, :, kk], x[:, :, kk:kk + lo])
        return acc + b[None, :, None]

    leaky = lambda v: jnp.where(v >= 0, v, 0.01 * v)
    h = conv1d_valid(x, w1, b1)
    h = gamma[None, :, None] * (h - run_mean[None, :, None]) / \
        jnp.sqrt(run_var[None, :, None] + eps) + beta[None, :, None]
    h = jnp.maximum(h, 0.0)             # ReLU (dropout = identity in eval)
    h = leaky(h)                        # no-op after ReLU, kept for fidelity
    y = conv1d_valid(h, w2, b2)
    return leaky(y)


if __name__ == "__main__":
    # Small shapes consistent with the module (scaled down from 768/256):
    N, C_IN, HIDDEN, K, L = 2, 16, 32, 7, 32

    key = jax.random.PRNGKey(0)
    keys = jax.random.split(key, 8)
    x = jax.random.normal(keys[0], (N, C_IN, L), jnp.float32)

    w1 = 0.05 * jax.random.normal(keys[1], (HIDDEN, C_IN, K), jnp.float32)
    b1 = 0.05 * jax.random.normal(keys[2], (HIDDEN,), jnp.float32)
    gamma = 1.0 + 0.1 * jax.random.normal(keys[3], (HIDDEN,), jnp.float32)
    beta = 0.1 * jax.random.normal(keys[4], (HIDDEN,), jnp.float32)
    run_mean = 0.1 * jax.random.normal(keys[5], (HIDDEN,), jnp.float32)
    run_var = jnp.abs(1.0 + 0.1 * jax.random.normal(keys[6], (HIDDEN,), jnp.float32))
    w2 = 0.05 * jax.random.normal(keys[7], (1, HIDDEN, K), jnp.float32)
    b2 = jnp.array([0.03], jnp.float32)

    out = discriminator_forward(x, w1, b1, gamma, beta, run_mean, run_var, w2, b2)
    out = jax.block_until_ready(out)

    ref = _reference(x, w1, b1, gamma, beta, run_mean, run_var, w2, b2)
    assert out.shape == (N, 1, L - 2 * (K - 1)), out.shape
    # bf16 MXU inputs -> loosened tolerance vs. f32 reference.
    assert jnp.allclose(out, ref, atol=5e-2, rtol=5e-2), \
        float(jnp.max(jnp.abs(out - ref)))

    # TODO(synk): dropout / batchnorm are implemented in inference mode only
    # (training-mode batch statistics + stochastic dropout are out of scope).
    print("KERNEL_OK")
</pallas_src>

<mosaic_0001>
module attributes {stable_mosaic.version = 11 : i64} {
  func.func @kernel(%arg0: i32, %arg1: memref<16x128xbf16, #tpu.memory_space<vmem>>, %arg2: memref<32x112xbf16, #tpu.memory_space<vmem>>, %arg3: memref<32x1xf32, #tpu.memory_space<vmem>>, %arg4: memref<32x1xf32, #tpu.memory_space<vmem>>, %arg5: memref<7x32xbf16, #tpu.memory_space<vmem>>, %arg6: memref<1x1xf32, #tpu.memory_space<smem>>, %arg7: memref<1x128xf32, #tpu.memory_space<vmem>>) attributes {dimension_semantics = [#tpu.dimension_semantics<parallel>], iteration_bounds = array<i64: 2>, scalar_prefetch = 0 : i64, scratch_operands = 0 : i64, tpu.core_type = #tpu.core_type<tc>, window_params = [{transform_indices = @transform_0, window_bounds = array<i64: 16, 128>}, {pipeline_mode = #tpu.pipeline_mode<synchronous>, transform_indices = @transform_1, window_bounds = array<i64: 32, 112>}, {pipeline_mode = #tpu.pipeline_mode<synchronous>, transform_indices = @transform_2, window_bounds = array<i64: 32, 1>}, {pipeline_mode = #tpu.pipeline_mode<synchronous>, transform_indices = @transform_3, window_bounds = array<i64: 32, 1>}, {pipeline_mode = #tpu.pipeline_mode<synchronous>, transform_indices = @transform_4, window_bounds = array<i64: 7, 32>}, {transform_indices = @transform_5, window_bounds = array<i64: 1, 1>}, {transform_indices = @transform_6, window_bounds = array<i64: 1, 128>}]} {
    %c0 = arith.constant 0 : index
    %c0_0 = arith.constant 0 : index
    %0 = vector.load %arg1[%c0, %c0_0] : memref<16x128xbf16, #tpu.memory_space<vmem>>, vector<16x128xbf16>
    %1 = vector.extract_strided_slice %0 {offsets = [0, 1], sizes = [16, 127], strides = [1, 1]} : vector<16x128xbf16> to vector<16x127xbf16>
    %2 = vector.extract_strided_slice %0 {offsets = [0, 0], sizes = [16, 1], strides = [1, 1]} : vector<16x128xbf16> to vector<16x1xbf16>
    %3 = tpu.concatenate %1, %2 in 1 : vector<16x127xbf16>, vector<16x1xbf16> -> vector<16x128xbf16>
    %4 = vector.extract_strided_slice %0 {offsets = [0, 2], sizes = [16, 126], strides = [1, 1]} : vector<16x128xbf16> to vector<16x126xbf16>
    %5 = vector.extract_strided_slice %0 {offsets = [0, 0], sizes = [16, 2], strides = [1, 1]} : vector<16x128xbf16> to vector<16x2xbf16>
    %6 = tpu.concatenate %4, %5 in 1 : vector<16x126xbf16>, vector<16x2xbf16> -> vector<16x128xbf16>
    %7 = vector.extract_strided_slice %0 {offsets = [0, 3], sizes = [16, 125], strides = [1, 1]} : vector<16x128xbf16> to vector<16x125xbf16>
    %8 = vector.extract_strided_slice %0 {offsets = [0, 0], sizes = [16, 3], strides = [1, 1]} : vector<16x128xbf16> to vector<16x3xbf16>
    %9 = tpu.concatenate %7, %8 in 1 : vector<16x125xbf16>, vector<16x3xbf16> -> vector<16x128xbf16>
    %10 = vector.extract_strided_slice %0 {offsets = [0, 4], sizes = [16, 124], strides = [1, 1]} : vector<16x128xbf16> to vector<16x124xbf16>
    %11 = vector.extract_strided_slice %0 {offsets = [0, 0], sizes = [16, 4], strides = [1, 1]} : vector<16x128xbf16> to vector<16x4xbf16>
    %12 = tpu.concatenate %10, %11 in 1 : vector<16x124xbf16>, vector<16x4xbf16> -> vector<16x128xbf16>
    %13 = vector.extract_strided_slice %0 {offsets = [0, 5], sizes = [16, 123], strides = [1, 1]} : vector<16x128xbf16> to vector<16x123xbf16>
    %14 = vector.extract_strided_slice %0 {offsets = [0, 0], sizes = [16, 5], strides = [1, 1]} : vector<16x128xbf16> to vector<16x5xbf16>
    %15 = tpu.concatenate %13, %14 in 1 : vector<16x123xbf16>, vector<16x5xbf16> -> vector<16x128xbf16>
    %16 = vector.extract_strided_slice %0 {offsets = [0, 6], sizes = [16, 122], strides = [1, 1]} : vector<16x128xbf16> to vector<16x122xbf16>
    %17 = vector.extract_strided_slice %0 {offsets = [0, 0], sizes = [16, 6], strides = [1, 1]} : vector<16x128xbf16> to vector<16x6xbf16>
    %18 = tpu.concatenate %16, %17 in 1 : vector<16x122xbf16>, vector<16x6xbf16> -> vector<16x128xbf16>
    %19 = tpu.concatenate %0, %3, %6, %9, %12, %15, %18 in 0 : vector<16x128xbf16>, vector<16x128xbf16>, vector<16x128xbf16>, vector<16x128xbf16>, vector<16x128xbf16>, vector<16x128xbf16>, vector<16x128xbf16> -> vector<112x128xbf16>
    %c0_1 = arith.constant 0 : index
    %c0_2 = arith.constant 0 : index
    %20 = vector.load %arg2[%c0_1, %c0_2] : memref<32x112xbf16, #tpu.memory_space<vmem>>, vector<32x112xbf16>
    %cst = arith.constant dense<0.000000e+00> : vector<32x128xf32>
    %21 = tpu.matmul %20, %19, %cst {dimension_numbers = #tpu.dot_dimension_numbers<[1], [0], [0], [1], [0, 0, 1, 1], [], []>} : vector<32x112xbf16>, vector<112x128xbf16>, vector<32x128xf32> -> vector<32x128xf32>
    %c0_3 = arith.constant 0 : index
    %c0_4 = arith.constant 0 : index
    %22 = vector.load %arg3[%c0_3, %c0_4] : memref<32x1xf32, #tpu.memory_space<vmem>>, vector<32x1xf32>
    %23 = vector.broadcast %22 : vector<32x1xf32> to vector<32x128xf32>
    %24 = arith.mulf %21, %23 : vector<32x128xf32>
    %c0_5 = arith.constant 0 : index
    %c0_6 = arith.constant 0 : index
    %25 = vector.load %arg4[%c0_5, %c0_6] : memref<32x1xf32, #tpu.memory_space<vmem>>, vector<32x1xf32>
    %26 = vector.broadcast %25 : vector<32x1xf32> to vector<32x128xf32>
    %27 = arith.addf %24, %26 : vector<32x128xf32>
    %cst_7 = arith.constant 0.000000e+00 : f32
    %28 = vector.broadcast %cst_7 : f32 to vector<32x128xf32>
    %29 = arith.maximumf %27, %28 : vector<32x128xf32>
    %30 = arith.truncf %29 : vector<32x128xf32> to vector<32x128xbf16>
    %c0_8 = arith.constant 0 : index
    %c0_9 = arith.constant 0 : index
    %31 = vector.load %arg5[%c0_8, %c0_9] : memref<7x32xbf16, #tpu.memory_space<vmem>>, vector<7x32xbf16>
    %cst_10 = arith.constant dense<0.000000e+00> : vector<7x128xf32>
    %32 = tpu.matmul %31, %30, %cst_10 {dimension_numbers = #tpu.dot_dimension_numbers<[1], [0], [0], [1], [0, 0, 1, 1], [], []>} : vector<7x32xbf16>, vector<32x128xbf16>, vector<7x128xf32> -> vector<7x128xf32>
    %33 = vector.extract_strided_slice %32 {offsets = [0, 0], sizes = [1, 128], strides = [1, 1]} : vector<7x128xf32> to vector<1x128xf32>
    %34 = vector.extract_strided_slice %32 {offsets = [1, 0], sizes = [1, 128], strides = [1, 1]} : vector<7x128xf32> to vector<1x128xf32>
    %35 = vector.extract_strided_slice %34 {offsets = [0, 1], sizes = [1, 127], strides = [1, 1]} : vector<1x128xf32> to vector<1x127xf32>
    %36 = vector.extract_strided_slice %34 {offsets = [0, 0], sizes = [1, 1], strides = [1, 1]} : vector<1x128xf32> to vector<1x1xf32>
    %37 = tpu.concatenate %35, %36 in 1 : vector<1x127xf32>, vector<1x1xf32> -> vector<1x128xf32>
    %38 = arith.addf %33, %37 : vector<1x128xf32>
    %39 = vector.extract_strided_slice %32 {offsets = [2, 0], sizes = [1, 128], strides = [1, 1]} : vector<7x128xf32> to vector<1x128xf32>
    %40 = vector.extract_strided_slice %39 {offsets = [0, 2], sizes = [1, 126], strides = [1, 1]} : vector<1x128xf32> to vector<1x126xf32>
    %41 = vector.extract_strided_slice %39 {offsets = [0, 0], sizes = [1, 2], strides = [1, 1]} : vector<1x128xf32> to vector<1x2xf32>
    %42 = tpu.concatenate %40, %41 in 1 : vector<1x126xf32>, vector<1x2xf32> -> vector<1x128xf32>
    %43 = arith.addf %38, %42 : vector<1x128xf32>
    %44 = vector.extract_strided_slice %32 {offsets = [3, 0], sizes = [1, 128], strides = [1, 1]} : vector<7x128xf32> to vector<1x128xf32>
    %45 = vector.extract_strided_slice %44 {offsets = [0, 3], sizes = [1, 125], strides = [1, 1]} : vector<1x128xf32> to vector<1x125xf32>
    %46 = vector.extract_strided_slice %44 {offsets = [0, 0], sizes = [1, 3], strides = [1, 1]} : vector<1x128xf32> to vector<1x3xf32>
    %47 = tpu.concatenate %45, %46 in 1 : vector<1x125xf32>, vector<1x3xf32> -> vector<1x128xf32>
    %48 = arith.addf %43, %47 : vector<1x128xf32>
    %49 = vector.extract_strided_slice %32 {offsets = [4, 0], sizes = [1, 128], strides = [1, 1]} : vector<7x128xf32> to vector<1x128xf32>
    %50 = vector.extract_strided_slice %49 {offsets = [0, 4], sizes = [1, 124], strides = [1, 1]} : vector<1x128xf32> to vector<1x124xf32>
    %51 = vector.extract_strided_slice %49 {offsets = [0, 0], sizes = [1, 4], strides = [1, 1]} : vector<1x128xf32> to vector<1x4xf32>
    %52 = tpu.concatenate %50, %51 in 1 : vector<1x124xf32>, vector<1x4xf32> -> vector<1x128xf32>
    %53 = arith.addf %48, %52 : vector<1x128xf32>
    %54 = vector.extract_strided_slice %32 {offsets = [5, 0], sizes = [1, 128], strides = [1, 1]} : vector<7x128xf32> to vector<1x128xf32>
    %55 = vector.extract_strided_slice %54 {offsets = [0, 5], sizes = [1, 123], strides = [1, 1]} : vector<1x128xf32> to vector<1x123xf32>
    %56 = vector.extract_strided_slice %54 {offsets = [0, 0], sizes = [1, 5], strides = [1, 1]} : vector<1x128xf32> to vector<1x5xf32>
    %57 = tpu.concatenate %55, %56 in 1 : vector<1x123xf32>, vector<1x5xf32> -> vector<1x128xf32>
    %58 = arith.addf %53, %57 : vector<1x128xf32>
    %59 = vector.extract_strided_slice %32 {offsets = [6, 0], sizes = [1, 128], strides = [1, 1]} : vector<7x128xf32> to vector<1x128xf32>
    %60 = vector.extract_strided_slice %59 {offsets = [0, 6], sizes = [1, 122], strides = [1, 1]} : vector<1x128xf32> to vector<1x122xf32>
    %61 = vector.extract_strided_slice %59 {offsets = [0, 0], sizes = [1, 6], strides = [1, 1]} : vector<1x128xf32> to vector<1x6xf32>
    %62 = tpu.concatenate %60, %61 in 1 : vector<1x122xf32>, vector<1x6xf32> -> vector<1x128xf32>
    %63 = arith.addf %58, %62 : vector<1x128xf32>
    %c0_11 = arith.constant 0 : index
    %c0_12 = arith.constant 0 : index
    %64 = memref.load %arg6[%c0_11, %c0_12] : memref<1x1xf32, #tpu.memory_space<smem>>
    %65 = vector.broadcast %64 : f32 to vector<1x128xf32>
    %66 = arith.addf %63, %65 : vector<1x128xf32>
    %cst_13 = arith.constant 0.000000e+00 : f32
    %67 = vector.broadcast %cst_13 : f32 to vector<1x128xf32>
    %68 = arith.cmpf oge, %66, %67 : vector<1x128xf32>
    %cst_14 = arith.constant 0.00999999977 : f32
    %69 = vector.broadcast %cst_14 : f32 to vector<1x128xf32>
    %70 = arith.mulf %69, %66 : vector<1x128xf32>
    %71 = arith.select %68, %66, %70 : vector<1x128xi1>, vector<1x128xf32>
    %c0_15 = arith.constant 0 : index
    %c0_16 = arith.constant 0 : index
    %72 = vector.load %arg7[%c0_15, %c0_16] : memref<1x128xf32, #tpu.memory_space<vmem>>, vector<1x128xf32>
    tpu.vector_store %arg7[%c0_15, %c0_16], %71 {strides = array<i32>} : memref<1x128xf32, #tpu.memory_space<vmem>>, vector<1x128xf32>,
    return
  }
  func.func @transform_0(%arg0: i32) -> (i32, i32) {
    %c0_i32 = arith.constant 0 : i32
    %c0_i32_0 = arith.constant 0 : i32
    return %c0_i32, %arg0 : i32, i32
  }
  func.func @transform_1(%arg0: i32) -> (i32, i32) {
    %c0_i32 = arith.constant 0 : i32
    %c0_i32_0 = arith.constant 0 : i32
    %c0_i32_1 = arith.constant 0 : i32
    return %c0_i32, %c0_i32_0 : i32, i32
  }
  func.func @transform_2(%arg0: i32) -> (i32, i32) {
    %c0_i32 = arith.constant 0 : i32
    %c0_i32_0 = arith.constant 0 : i32
    %c0_i32_1 = arith.constant 0 : i32
    return %c0_i32, %c0_i32_0 : i32, i32
  }
  func.func @transform_3(%arg0: i32) -> (i32, i32) {
    %c0_i32 = arith.constant 0 : i32
    %c0_i32_0 = arith.constant 0 : i32
    %c0_i32_1 = arith.constant 0 : i32
    return %c0_i32, %c0_i32_0 : i32, i32
  }
  func.func @transform_4(%arg0: i32) -> (i32, i32) {
    %c0_i32 = arith.constant 0 : i32
    %c0_i32_0 = arith.constant 0 : i32
    %c0_i32_1 = arith.constant 0 : i32
    return %c0_i32, %c0_i32_0 : i32, i32
  }
  func.func @transform_5(%arg0: i32) -> (i32, i32) {
    %c0_i32 = arith.constant 0 : i32
    %c0_i32_0 = arith.constant 0 : i32
    %c0_i32_1 = arith.constant 0 : i32
    return %c0_i32, %c0_i32_0 : i32, i32
  }
  func.func @transform_6(%arg0: i32) -> (i32, i32) {
    %c0_i32 = arith.constant 0 : i32
    %c0_i32_0 = arith.constant 0 : i32
    return %c0_i32, %arg0 : i32, i32
  }
}

</mosaic_0001>

<bundles_post_ra>
// kernel: tpu_custom_call.1
= control target key start
LH: loop header
LB: loop body
LE: loop exit
PB: predicated region body
PF: predicated region fallthrough
CT: control target
= control target key end

     0   :  { %s998_s0 = inlined_call_operand.vmem [shape: bf16[16,256], index: 0, kind: input, shape index: {}]   ;;  %s999_s1 = inlined_call_operand.vmem [shape: bf16[32,112], index: 1, kind: input, shape index: {}]   ;;  %s1000_s2 = inlined_call_operand.vmem [shape: f32[32,1], index: 2, kind: input, shape index: {}]   ;;  %s1001_s3 = inlined_call_operand.vmem [shape: f32[32,1], index: 3, kind: input, shape index: {}]   ;;  %s1002_s4 = inlined_call_operand.vmem [shape: bf16[7,32], index: 4, kind: input, shape index: {}]   ;;  %s1003_s5 = inlined_call_operand.<no memory space> [shape: f32[1,1], index: 5, kind: input, shape index: {}]   ;;  %s1004_s6 = inlined_call_operand.hbm [shape: f32[1,256], index: 6, kind: output, shape index: {}]  }
   0x1   :  { %11 = sst [smem:[#allocation2]] %s1003_s5 }
   0x2   :  { %12 = vsyncpa [#allocation5], 0 }
   0x3   :  { %14 = vsyncpa [#allocation5 + $0x1], 0  ;;  %s848_s23 = smov 0   ;;  %s850_s24 = smov 0  }
   0x4   :  { %s852_s25 = smov 0   ;;  %s854_s26 = smov 0  }
   0x5 LB: > { %s1005_s5 = sadd.s32 4294967295, %s798_s26   ;;  %s631_s27 = sadd.s32 4294967294, %s798_s26   ;;  %s798_s26 = sphi %s854_s26, %s1012_s26   ;;  %s794_s25 = sphi %s852_s25, %s1011_s25   ;;  %s790_s24 = sphi %s850_s24, %s1010_s24   ;;  %s786_s23 = sphi %s848_s23, %s1009_s23  }
   0x6   : > { %s871_s28 = sadd.s32 1, %s798_s26   ;;  %s27_s29 = sadd.s32 1, %s794_s25 }
   0x7   : > { %s24_s30 = ssub.s32 %s798_s26, %s871_s28  ;;  %p34_p0 = scmp.ne.s32.totalorder %s794_s25, %s790_s24 }
   0x8   : > { %p25_p1 = scmp.eq.s32.totalorder %s24_s30, 0  ;;  %p35_p2 = scmp.eq.s32.totalorder %s798_s26, 0 }
   0x9   : > { %p169_p3 = scmp.eq.s32.totalorder %s1005_s5, 1  ;;  %p174_p4 = scmp.ne.s32.totalorder %s790_s24, %s786_s23 }
   0xa   : > { %s884_s7 = scalar_select %p25_p1, %s794_s25, %s27_s29  }
   0xb   : > { %p36_p5 = por %p35_p2, %p34_p0  ;;  %p886_p6 = por %p169_p3, %p34_p0 }
   0xc   : > { %p175_p7 = scmp.eq.s32.totalorder %s631_s27, 1  ;;  %p633_p9 = scmp.ge.s32.totalorder %s798_s26, 2 }
   0xe   : > { %p890_p8 = por %p175_p7, %p174_p4  ;;  %206 = sbr.rel (%p633_p9) target bundleno = 24 (0x18), region = 36 }
  0x13   : > { %209 = sbr.rel (!%p36_p5) target bundleno = 24 (0x18), region = 40  ;;  %s211_s10 = sand.u32 (%p36_p5), 1, %s794_s25  }
  0x14   : > { %s635_s11 = sshll.u32 (%p36_p5), %s798_s26, 2  ;;  %s634_s12 = sshll.u32 (%p36_p5), %s211_s10, 3 }
  0x15   : > { %s215_s15 = scalar_lea.vmem (%p36_p5), %s998_s0, %s635_s11  ;;  %s213_s16 = scalar_lea.vmem (%p36_p5), [#allocation3], %s634_s12 }
  0x16   : > { %v232_v0 = vld [vmem:[%s215_s15] sm:$0xf] (%p36_p5)  ;;  %v234_v1 = vld [vmem:[%s215_s15 + $0x8] sm:$0xf] (%p36_p5) }
  0x17   : > { %233 = vst [vmem:[%s213_s16] sm:$0xf] (%p36_p5), %v232_v0  ;;  %235 = vst [vmem:[%s213_s16 + $0x4] sm:$0xf] (%p36_p5), %v234_v1 }
  0x18 PF: > { %p636_p10 = scmp.ge.s32.totalorder %s798_s26, 1  ;;  %p262_p11 = scmp.lt.s32.totalorder %s798_s26, 3 }
  0x1a   : > { %p263_p12 = pnand %p636_p10, %p262_p11 }
  0x1b   : > { %s905_s17 = sand.u32 (!%p263_p12), 1, %s790_s24   ;;  %s800_s20 = smov (!%p263_p12), 122  }
  0x1c   : > { %266 = sbr.rel (%p263_p12) target bundleno = 729 (0x2d9), region = 81  ;;  %s637_s18 = sshll.u32 (!%p263_p12), %s905_s17, 3 }
  0x1d   : > { %s271_s19 = scalar_lea.vmem (!%p263_p12), [#allocation3], %s637_s18  ;;  %s801_s21 = smov (!%p263_p12), 124  }
  0x1e   : > { %s802_s22 = smov (!%p263_p12), 123   ;;  %s803_s27 = smov (!%p263_p12), 125  }
  0x1f   : > { %s804_s29 = smov (!%p263_p12), 126   ;;  %s805_s30 = smov (!%p263_p12), 127  }
  0x20   : > { %s558_s14 = scalar_lea.sflag (!%p263_p12), [#allocation5], %s905_s17  ;;  %s809_s16 = smov (!%p263_p12), [#allocation4]  }
  0x21   : > { %v735_v2 = vld [vmem:[%s271_s19] sm:$0xff]   ;;  %vm344_vm0 = vcmask 916480   ;;  %v403_v4 = vld [vmem:[%s1000_s2 + $0x18] sm:$0xff]  ;;  %v402_v5 = vld [vmem:[%s1000_s2 + $0x10] sm:$0xff]  ;;  %v806_v6 = vmov 0   ;;  %v807_v20 = vmov 0.0  }
  0x22   : > { %325 = vrot.lane.b32.xlu0 %v735_v2, %s800_s20  ;;  %317 = vrot.lane.b32.xlu1 %v735_v2, %s801_s21  ;;  %v736_v3 = vld [vmem:[%s999_s1] sm:$0xff]   ;;  %v430_v7 = vld [vmem:[%s1001_s3 + $0x10] sm:$0xff]  ;;  %vm808_vm1 = vmmov 0   ;;  %vm463_vm2 = vcmask 261120   ;;  %s742_s18 = sshll.u32 %s809_s16, 4  ;;  %s743_s18 = int_to_ptr.vmem [resolvable:$false] %s742_s18 }
  0x23   : > { %673 = vmatprep.mubr.msk.bf16.mxu0 %vm344_vm0, %v736_v3  ;;  %734 = vset.pattern.permute.xlu1 %v806_v6  ;;  %v431_v8 = vld [vmem:[%s1001_s3 + $0x18] sm:$0xff]  ;;  %v400_v9 = vld [vmem:[%s1000_s2] sm:$0xff]  ;;  %v401_v10 = vld [vmem:[%s1000_s2 + $0x8] sm:$0xff]  ;;  %s744_s5 = scalar_lea.vmem %s743_s18, 32 }
  0x24   : > { %733 = vset.pattern.permute.xlu0 %v806_v6  ;;  %v428_v11 = vld [vmem:[%s1001_s3] sm:$0xff]  ;;  %v429_v12 = vld [vmem:[%s1001_s3 + $0x8] sm:$0xff]  ;;  %677 = vmatprep.subr.bf16.mxu1 %v807_v20 }
  0x25   : > { %v737_v19 = vld [vmem:[%s999_s1 + $0x8] sm:$0xff]   ;;  %681 = vmatprep.mubr.msk.bf16.mxu1 %vm808_vm1, %v807_v20  ;;  %v462_v47 = vld [vmem:[%s1002_s4] sm:$0xf] }
  0x26   : > { %321 = vrot.lane.b32.xlu0 %v735_v2, %s802_s22  ;;  %313 = vrot.lane.b32.xlu1 %v735_v2, %s803_s27 }
  0x2a   : > { %309 = vrot.lane.b32.xlu0 %v735_v2, %s804_s29  ;;  %305 = vrot.lane.b32.xlu1 %v735_v2, %s805_s30 }
  0x2e   : > { %421 = vperm.xlu1 %734, %v403_v4   ;;  %416 = vperm.xlu0 %733, %v402_v5  }
  0x32   : > { %444 = vperm.xlu1 %734, %v430_v7   ;;  %449 = vperm.xlu0 %733, %v431_v8  }
  0x36   : > { %406 = vperm.xlu1 %734, %v400_v9   ;;  %411 = vperm.xlu0 %733, %v401_v10  }
  0x3a   : > { %434 = vperm.xlu1 %734, %v428_v11   ;;  %439 = vperm.xlu0 %733, %v429_v12  }
  0x94   : > { %v326_v13 = vpop.permute.xlu0 %325  ;;  %v318_v14 = vpop.permute.xlu1 %317 }
  0x95   : > { %659 = vmatprep.subr.bf16.mxu0 %v326_v13 }
  0x96   : > { %660 = vmatpush3.bf16.msra.mxu0 %v326_v13 }
  0x98   : > { %v322_v15 = vpop.permute.xlu0 %321  ;;  %v314_v16 = vpop.permute.xlu1 %313 }
  0x99   : > { %661 = vmatprep.subr.bf16.mxu0 %v322_v15 }
  0x9a   : > { %662 = vmatpush3.bf16.msra.mxu0 %v322_v15 }
  0x9b   : > { %663 = vmatprep.subr.bf16.mxu0 %v318_v14 }
  0x9c   : > { %v310_v17 = vpop.permute.xlu0 %309  ;;  %v306_v18 = vpop.permute.xlu1 %305 }
  0x9e   : > { %664 = vmatpush3.bf16.msra.mxu0 %v318_v14 }
  0x9f   : > { %665 = vmatprep.subr.bf16.mxu0 %v314_v16 }
  0xa2   : > { %666 = vmatpush3.bf16.msra.mxu0 %v314_v16 }
  0xa3   : > { %667 = vmatprep.subr.bf16.mxu0 %v310_v17 }
  0xa6   : > { %668 = vmatpush3.bf16.msra.mxu0 %v310_v17 }
  0xa7   : > { %669 = vmatprep.subr.bf16.mxu0 %v306_v18 }
  0xa9   : > { %v422_v21 = vpop.permute.xlu1 %421  ;;  %v417_v22 = vpop.permute.xlu0 %416 }
  0xaa   : > { %670 = vmatpush3.bf16.msra.mxu0 %v306_v18 }
  0xab   : > { %671 = vmatprep.subr.bf16.mxu0 %v735_v2 }
  0xad   : > { %v445_v23 = vpop.permute.xlu1 %444  ;;  %v450_v24 = vpop.permute.xlu0 %449 }
  0xae   : > { %672 = vmatpush3.bf16.msra.mxu0 %v735_v2 }
  0xb1   : > { %674 = vmatmul.mubr.msk.bf16.vlgmr.msra.gmra.mxu0 %vm344_vm0, %v737_v19  ;;  %v407_v26 = vpop.permute.xlu1 %406  ;;  %v412_v28 = vpop.permute.xlu0 %411 }
  0xb5   : > { %v435_v37 = vpop.permute.xlu1 %434  ;;  %v440_v38 = vpop.permute.xlu0 %439 }
 0x171   : > { %v675_v25 = vpop.f32.mrf.mxu0 }
 0x172   : > { %v426_v27 = vmul.f32 %v675_v25, %v417_v22 }
 0x173   : > { %v385_v29 = vpop.f32.mrf.mxu0 }
 0x174   : > { %v454_v31 = vadd.f32 %v445_v23, %v426_v27  ;;  %v424_v32 = vmul.f32 %v407_v26, %v385_v29 }
 0x175   : > { %v676_v30 = vpop.f32.mrf.mxu0 }
 0x176   : > { %v427_v33 = vmul.f32 %v676_v30, %v422_v21  ;;  %v458_v39 = vmax.f32 %v454_v31, 0.0  ;;  %v452_v40 = vadd.f32 %v435_v37, %v424_v32 }
 0x177   : > { %v388_v34 = vpop.f32.mrf.mxu0 }
 0x178   : > { %v455_v35 = vadd.f32 %v450_v24, %v427_v33  ;;  %v425_v36 = vmul.f32 %v412_v28, %v388_v34  ;;  %v456_v45 = vmax.f32 %v452_v40, 0.0 }
 0x17a   : > { %v459_v41 = vmax.f32 %v455_v35, 0.0  ;;  %v453_v42 = vadd.f32 %v440_v38, %v425_v36 }
 0x17c   : > { %v457_v43 = vmax.f32 %v453_v42, 0.0  ;;  %v461_v44 = vpack.c.bf16 %v459_v41, %v458_v39 }
 0x17e   : > { %678 = vmatpush3.bf16.msra.mxu1 %v461_v44  ;;  %v460_v46 = vpack.c.bf16 %v457_v43, %v456_v45 }
 0x17f   : > { %679 = vmatprep.subr.bf16.mxu1 %v807_v20 }
 0x182   : > { %680 = vmatpush3.bf16.msra.mxu1 %v460_v46 }
 0x185   : > { %682 = vmatmul.mubr.msk.bf16.vlgmr.msra.gmra.mxu1 %vm463_vm2, %v462_v47 }
 0x245   : > { %v501_v48 = vpop.f32.mrf.mxu1 }
 0x246   : > { %515 = vrot.lane.b32.xlu0 %v501_v48, %s804_s29  ;;  %508 = vrot.lane.b32.xlu1 %v501_v48, %s805_s30  ;;  %s550_s29 = sld [smem:[#allocation2]] }
 0x247   : > { %v683_v49 = vpop.f32.mrf.mxu1 }
 0x249   : > { %v504_v50 = vpop.f32.mrf.mxu1 }
 0x24a   : > { %529 = vrot.lane.b32.xlu0 %v501_v48, %s801_s21  ;;  %522 = vrot.lane.b32.xlu1 %v501_v48, %s803_s27 }
 0x24b   : > { %v684_v51 = vpop.f32.mrf.mxu1 }
 0x24c   : > { %v551_v5 = vstv %s550_s29 }
 0x24e   : > { %543 = vrot.lane.b32.xlu0 %v501_v48, %s800_s20  ;;  %536 = vrot.lane.b32.xlu1 %v501_v48, %s802_s22  ;;  %s1008_s20 = sadd.s32 4294967295, %s798_s26   ;;  %s296_s22 = scalar_lea.vmem [#allocation4], %s905_s17 }
 0x24f   : > { %s644_s21 = sshll.u32 %s1008_s20, 4  ;;  %s570_s27 = sshll.u32 %s296_s22, 4  ;;  %s571_s27 = int_to_ptr.vmem [resolvable:$true] %s570_s27 }
 0x250   : > { %s961_s13 = scalar_lea.hbm %s1004_s6, %s644_s21  ;;  %s738_s15 = scalar_lea.vmem %s571_s27, 16 }
 0x251   : > { %p739_p13 = scmp.ne.s32.totalorder %s571_s27, %s738_s15  ;;  %p745_p2 = scmp.lt.s32.totalorder %s571_s27, %s743_s18 }
 0x252   : > { %p746_p3 = scmp.lt.s32.totalorder %s744_s5, %s738_s15 }
 0x253   : > { %p740_p0 = pnand %p739_p13, %p886_p6 }
 0x254   : > { %p747_p4 = por %p746_p3, %p745_p2 }
 0x255   : > { %p741_p1 = pneg %p740_p0 }
 0x257   : > { %p748_p5 = pnand %p747_p4, %p741_p1 }
 0x2b8   : > { %v516_v52 = vpop.permute.xlu0 %515  ;;  %v509_v53 = vpop.permute.xlu1 %508 }
 0x2b9   : > { %v512_v54 = vrot.slane %v509_v53, 1  ;;  %v519_v55 = vrot.slane %v516_v52, 2 }
 0x2bb   : > { %v514_v56 = vadd.f32 %v512_v54, %v501_v48 }
 0x2bc   : > { %v530_v57 = vpop.permute.xlu0 %529  ;;  %v523_v58 = vpop.permute.xlu1 %522 }
 0x2bd   : > { %v521_v59 = vadd.f32 %v519_v55, %v514_v56  ;;  %v526_v60 = vrot.slane %v523_v58, 3  ;;  %v533_v61 = vrot.slane %v530_v57, 4 }
 0x2bf   : > { %v528_v62 = vadd.f32 %v526_v60, %v521_v59 }
 0x2c0   : > { %v544_v63 = vpop.permute.xlu0 %543  ;;  %v537_v0 = vpop.permute.xlu1 %536 }
 0x2c1   : > { %v535_v1 = vadd.f32 %v533_v61, %v528_v62  ;;  %v540_v2 = vrot.slane %v537_v0, 5  ;;  %v547_v3 = vrot.slane %v544_v63, 6 }
 0x2c3   : > { %v542_v4 = vadd.f32 %v540_v2, %v535_v1 }
 0x2c5   : > { %v549_v6 = vadd.f32 %v547_v3, %v542_v4 }
 0x2c7   : > { %v552_v7 = vadd.f32 %v551_v5, %v549_v6 }
 0x2c9   : > { %vm553_vm3 = vcmp.ge.f32.partialorder %v552_v7, 0.0  ;;  %v554_v8 = vmul.f32 0.01, %v552_v7 }
 0x2cb   : > { %v555_v9 = vsel %vm553_vm3, %v552_v7, %v554_v8 }
 0x2cc   : > { %556 = vst [vmem:[%s296_s22] sm:$0x1] %v555_v9 }
 0x2cd   : > { %751 = shalt.err (!%p748_p5)
}
 0x2ce   : > { %s752_s19 = scalar_lea.hbm %s961_s13, 16  ;;  %s756_s11 = scalar_lea.hbm %s1004_s6, 32 }
 0x2cf   : > { %p753_p7 = scmp.ne.s32.totalorder %s961_s13, %s752_s19  ;;  %p757_p12 = scmp.lt.s32.totalorder %s961_s13, %s1004_s6 }
 0x2d0   : > { %p758_p13 = scmp.lt.s32.totalorder %s756_s11, %s752_s19 }
 0x2d1   : > { %p754_p10 = pnand %p753_p7, %p886_p6 }
 0x2d2   : > { %p759_p0 = por %p758_p13, %p757_p12 }
 0x2d3   : > { %p755_p11 = pneg %p754_p10 }
 0x2d5   : > { %p760_p1 = pnand %p759_p0, %p755_p11 }
 0x2d7   : > { %763 = shalt.err (!%p760_p1)
}
 0x2d8   : > { %685 = dma.vmem_to_hbm [thread:$0]  (%p886_p6), %s571_s27, 16, %s961_s13, %s558_s14  }
 0x2d9 PF: > { %s582_s21 = sand.u32 1, %s786_s23   ;;  %p688_p2 = pnand %p633_p9, %p890_p8 }
 0x2da   : > { %s583_s22 = scalar_lea.sflag [#allocation5], %s582_s21 }
 0x2db   : > { %p689_p3 = pneg %p688_p2 }
 0x2dd   : > { %781 = dma.done.wait (%p689_p3), %s583_s22, 16  }
 0x2de   : > { %783 = vsyncadd (%p689_p3), %s583_s22, 4294967280  ;;  %p17_p4 = scmp.ge.s32.totalorder %s871_s28, 4   ;;  %s1009_s23 = smov %s790_s24 }
 0x2df   : > { %s1010_s24 = smov %s794_s25  ;;  %s1011_s25 = smov %s884_s7 }
 0x2e0   : > { %s1012_s26 = smov %s871_s28  ;;  %19 = sbr.rel (!%p17_p4) target bundleno = 5 (0x5), region = 125 }
 0x2e5   :  { %587 = vsyncpa [#allocation5], 1 }
 0x2e6   :  { %589 = vsyncpa [#allocation5 + $0x1], 1 }

</bundles_post_ra>
